<compile_context>
chip_gen: v7x
topology: tpu7x:2x2x1
jax: 0.10.0
libtpu: 0.0.40
codegen_flags: <defaults>
</compile_context>

<pallas_src>
import numpy as np
import jax
import jax.numpy as jnp
from jax.experimental import pallas as pl
from jax.experimental.pallas import tpu as pltpu

EPS = 1e-5
BN_SCALE = 1.0 / np.sqrt(1.0 + EPS)  # eval-mode BN with default running stats


# ------------------------------- Pallas kernel ------------------------------

def _hswish(y):
    return y * jnp.clip(y + 3.0, 0.0, 6.0) * (1.0 / 6.0)


def fused_forward_kernel(p_ref, w1_ref, s_ref, wdw_ref, wpw_ref,
                         gap_ref, wl_ref, bl_ref, o_ref):
    """Entire MicroPizzaNetHardSwish forward; all intermediates stay in VMEM/vregs.

    p_ref   : (N*64, 32)  conv1 im2col patches, rows grouped by pool1 window offset,
                          columns = (tap, cin) with 5 zero-pad columns.
    w1_ref  : (32, 8)     conv1 weights, BN folded, zero-padded rows.
    s_ref   : (9*N*16, N*16) constant 0/1 depthwise shift matrices (one 32-row block
                          per 3x3 tap); also re-orders rows into pool2 window groups.
    wdw_ref : (9, 8)      depthwise weights per tap/channel, BN folded.
    wpw_ref : (8, 16)     pointwise weights, BN folded.
    gap_ref : (N, N*4)    constant 0.25/0 global-average-pool matrix.
    wl_ref  : (16, 6), bl_ref: (1, 6) classifier.
    o_ref   : (N, 6) logits.
    """
    q = s_ref.shape[1]          # N*16 positions after maxpool1
    r = q // 4                  # N*4  positions after maxpool2

    # block1: conv3x3 s2 p1 (3->8) + BN + HardSwish   (BN folded into w1)
    y1 = _hswish(jnp.dot(p_ref[...], w1_ref[...],
                         preferred_element_type=jnp.float32))          # (N*64, 8)
    # block1: maxpool 2x2 -- rows are pre-grouped by window offset, so the pool is an
    # elementwise max over four aligned sublane slices.
    m1 = jnp.maximum(jnp.maximum(y1[0:q], y1[q:2 * q]),
                     jnp.maximum(y1[2 * q:3 * q], y1[3 * q:4 * q]))     # (N*16, 8)

    # block2: depthwise 3x3 p1 + BN + HardSwish.  The constant shift matrices gather
    # the 9 zero-padded taps (and permute rows into pool2-window order) in one dot.
    taps = jnp.dot(s_ref[...], m1, preferred_element_type=jnp.float32)  # (9*N*16, 8)
    wdw = wdw_ref[...]
    acc = taps[0:q] * wdw[0:1, :]
    for t in range(1, 9):
        acc = acc + taps[t * q:(t + 1) * q] * wdw[t:t + 1, :]
    ydw = _hswish(acc)                                                  # (N*16, 8)

    # block2: pointwise 1x1 (8->16) + BN + HardSwish   (BN folded into wpw)
    ypw = _hswish(jnp.dot(ydw, wpw_ref[...],
                          preferred_element_type=jnp.float32))          # (N*16, 16)
    # block2: maxpool 2x2 (rows already grouped by window offset via s_ref ordering)
    m2 = jnp.maximum(jnp.maximum(ypw[0:r], ypw[r:2 * r]),
                     jnp.maximum(ypw[2 * r:3 * r], ypw[3 * r:4 * r]))   # (N*4, 16)

    # head: global average pool (constant 0.25 matrix) + linear
    g = jnp.dot(gap_ref[...], m2, preferred_element_type=jnp.float32)   # (N, 16)
    o_ref[...] = jnp.dot(g, wl_ref[...],
                         preferred_element_type=jnp.float32) + bl_ref[...]


# ------------------------- constant-matrix construction ----------------------

def build_dw_shift_matrix(N):
    """(9*N*16, N*16) 0/1 matrices: one block per 3x3 tap of the depthwise conv.

    Input rows (pool1 output) are ordered  n*16 + i*4 + j  over the 4x4 grid.
    Output rows are ordered ((i%2)*2 + j%2)*(N*4) + n*4 + (i//2)*2 + (j//2), i.e.
    grouped by maxpool2 window offset so pool2 becomes four aligned sublane slices.
    Zero rows implement the conv's zero padding.
    """
    q = N * 16
    S = np.zeros((9 * q, q), np.float32)
    t = 0
    for u in (-1, 0, 1):
        for v in (-1, 0, 1):
            for n in range(N):
                for i in range(4):
                    for j in range(4):
                        si, sj = i + u, j + v
                        if 0 <= si < 4 and 0 <= sj < 4:
                            r_out = (((i % 2) * 2 + (j % 2)) * N + n) * 4 \
                                    + (i // 2) * 2 + (j // 2)
                            r_in = n * 16 + si * 4 + sj
                            S[t * q + r_out, r_in] = 1.0
            t += 1
    return S


def build_gap_matrix(N):
    """(N, N*4) matrix averaging the 4 surviving spatial positions of each image."""
    G = np.zeros((N, N * 4), np.float32)
    for n in range(N):
        G[n, n * 4:(n + 1) * 4] = 0.25
    return G


def build_conv1_patches(x_nchw):
    """im2col for conv1 (3x3, stride 2, pad 1) on a 16x16 input.

    Output: (N*64, 32) with rows ordered ((ho%2)*2 + wo%2)*(N*16) + n*16 +
    (ho//2)*4 + (wo//2)  -- i.e. grouped by maxpool1 window offset -- and columns
    (ki*3+kj)*3 + c, zero-padded 27 -> 32.  Runs once on the raw input (no
    inter-stage HBM round trips).
    """
    N = x_nchw.shape[0]
    x = jnp.transpose(x_nchw, (0, 2, 3, 1))                    # NHWC (N,16,16,3)
    xp = jnp.pad(x, ((0, 0), (1, 1), (1, 1), (0, 0)))          # (N,18,18,3)
    taps = []
    for ki in range(3):
        for kj in range(3):
            taps.append(xp[:, ki:ki + 16:2, kj:kj + 16:2, :])  # (N,8,8,3)
    p = jnp.stack(taps, axis=3)                                # (N,8,8,9,3)
    p = p.reshape(N, 4, 2, 4, 2, 27)                           # n,i1,a,j1,b,k
    p = jnp.transpose(p, (2, 4, 0, 1, 3, 5))                   # a,b,n,i1,j1,k
    p = p.reshape(4 * N * 16, 27)
    return jnp.pad(p, ((0, 0), (0, 5)))                        # (N*64, 32)


# ------------------------------ params & forward -----------------------------

def make_params(key, num_classes=6):
    k1, k2, k3, k4 = jax.random.split(key, 4)
    raw = {
        # PyTorch conv weight layouts (O, I/groups, kh, kw), kaiming-normal-ish
        "w1":  jax.random.normal(k1, (8, 3, 3, 3), jnp.float32) * np.sqrt(2.0 / (8 * 9)),
        "wdw": jax.random.normal(k2, (8, 1, 3, 3), jnp.float32) * np.sqrt(2.0 / 9),
        "wpw": jax.random.normal(k3, (16, 8, 1, 1), jnp.float32) * np.sqrt(2.0 / 16),
        "wl":  jax.random.normal(k4, (num_classes, 16), jnp.float32) * 0.01,
        "bl":  jnp.zeros((num_classes,), jnp.float32),
    }
    # Fold the (uniform) eval-mode BN scale directly into the conv weights (exact).
    w1_mat = jnp.transpose(raw["w1"], (2, 3, 1, 0)).reshape(27, 8) * BN_SCALE
    w1_mat = jnp.pad(w1_mat, ((0, 5), (0, 0)))                          # (32, 8)
    wdw_mat = jnp.transpose(raw["wdw"][:, 0, :, :], (1, 2, 0)).reshape(9, 8) * BN_SCALE
    wpw_mat = raw["wpw"][:, :, 0, 0].T * BN_SCALE                       # (8, 16)
    prm = {
        "w1_mat":  w1_mat,
        "wdw_mat": wdw_mat,
        "wpw_mat": wpw_mat,
        "wl_mat":  raw["wl"].T,                                         # (16, 6)
        "bl":      raw["bl"].reshape(1, num_classes),
    }
    return raw, prm


def micropizza_forward(x_nchw, prm):
    N = x_nchw.shape[0]
    patches = build_conv1_patches(x_nchw)                               # (N*64, 32)
    s_all = jnp.asarray(build_dw_shift_matrix(N))                       # (9*N*16, N*16)
    gapmat = jnp.asarray(build_gap_matrix(N))                           # (N, N*4)

    vmem_specs = [pl.BlockSpec(memory_space=pltpu.MemorySpace.VMEM) for _ in range(8)]
    return pl.pallas_call(
        fused_forward_kernel,
        out_shape=jax.ShapeDtypeStruct((N, prm["wl_mat"].shape[1]), jnp.float32),
        in_specs=vmem_specs,
        out_specs=pl.BlockSpec(memory_space=pltpu.MemorySpace.VMEM),
    )(patches, prm["w1_mat"], s_all, prm["wdw_mat"], prm["wpw_mat"],
      gapmat, prm["wl_mat"], prm["bl"])


# --------------------------------- reference ---------------------------------

def reference_forward(x_nchw, raw):
    """Pure-JAX reference (lax conv / reduce_window) for validation."""
    def hswish(v):
        return v * jnp.clip(v + 3.0, 0.0, 6.0) / 6.0

    y = jax.lax.conv_general_dilated(
        x_nchw, raw["w1"], (2, 2), ((1, 1), (1, 1)),
        dimension_numbers=("NCHW", "OIHW", "NCHW"))
    y = hswish(y * BN_SCALE)
    y = jax.lax.reduce_window(y, -jnp.inf, jax.lax.max,
                              (1, 1, 2, 2), (1, 1, 2, 2), "VALID")
    y = jax.lax.conv_general_dilated(
        y, raw["wdw"], (1, 1), ((1, 1), (1, 1)),
        dimension_numbers=("NCHW", "OIHW", "NCHW"), feature_group_count=8)
    y = hswish(y * BN_SCALE)
    y = jax.lax.conv_general_dilated(
        y, raw["wpw"], (1, 1), ((0, 0), (0, 0)),
        dimension_numbers=("NCHW", "OIHW", "NCHW"))
    y = hswish(y * BN_SCALE)
    y = jax.lax.reduce_window(y, -jnp.inf, jax.lax.max,
                              (1, 1, 2, 2), (1, 1, 2, 2), "VALID")
    g = jnp.mean(y, axis=(2, 3))
    return g @ raw["wl"].T + raw["bl"]


if __name__ == "__main__":
    key = jax.random.PRNGKey(0)
    kx, kp = jax.random.split(key)
    x = jax.random.normal(kx, (2, 3, 16, 16), jnp.float32)   # NCHW like PyTorch

    raw, prm = make_params(kp, num_classes=6)

    fwd = jax.jit(micropizza_forward)
    out = jax.block_until_ready(fwd(x, prm))
    ref = jax.block_until_ready(reference_forward(x, raw))

    assert out.shape == (2, 6), out.shape
    np.testing.assert_allclose(np.asarray(out), np.asarray(ref),
                               rtol=1e-4, atol=1e-4)
    print("KERNEL_OK")
</pallas_src>

<mosaic_0001>
module attributes {stable_mosaic.version = 11 : i64} {
  func.func @fused_forward_kernel(%arg0: memref<128x32xf32, #tpu.memory_space<vmem>>, %arg1: memref<32x8xf32, #tpu.memory_space<vmem>>, %arg2: memref<288x32xf32, #tpu.memory_space<vmem>>, %arg3: memref<9x8xf32, #tpu.memory_space<vmem>>, %arg4: memref<8x16xf32, #tpu.memory_space<vmem>>, %arg5: memref<2x8xf32, #tpu.memory_space<vmem>>, %arg6: memref<16x6xf32, #tpu.memory_space<vmem>>, %arg7: memref<1x6xf32, #tpu.memory_space<vmem>>, %arg8: memref<2x6xf32, #tpu.memory_space<vmem>>) attributes {dimension_semantics = [], scalar_prefetch = 0 : i64, scratch_operands = 0 : i64, tpu.core_type = #tpu.core_type<tc>} {
    %c0 = arith.constant 0 : index
    %c0_0 = arith.constant 0 : index
    %0 = vector.load %arg0[%c0, %c0_0] : memref<128x32xf32, #tpu.memory_space<vmem>>, vector<128x32xf32>
    %c0_1 = arith.constant 0 : index
    %c0_2 = arith.constant 0 : index
    %1 = vector.load %arg1[%c0_1, %c0_2] : memref<32x8xf32, #tpu.memory_space<vmem>>, vector<32x8xf32>
    %cst = arith.constant dense<0.000000e+00> : vector<128x8xf32>
    %2 = tpu.matmul %0, %1, %cst {dimension_numbers = #tpu.dot_dimension_numbers<[1], [0], [0], [1], [0, 0, 1, 1], [], []>} : vector<128x32xf32>, vector<32x8xf32>, vector<128x8xf32> -> vector<128x8xf32>
    %cst_3 = arith.constant 3.000000e+00 : f32
    %3 = vector.broadcast %cst_3 : f32 to vector<128x8xf32>
    %4 = arith.addf %2, %3 : vector<128x8xf32>
    %cst_4 = arith.constant 0.000000e+00 : f32
    %cst_5 = arith.constant 6.000000e+00 : f32
    %5 = vector.broadcast %cst_4 : f32 to vector<128x8xf32>
    %6 = arith.maximumf %5, %4 : vector<128x8xf32>
    %7 = vector.broadcast %cst_5 : f32 to vector<128x8xf32>
    %8 = arith.minimumf %7, %6 : vector<128x8xf32>
    %9 = arith.mulf %2, %8 : vector<128x8xf32>
    %cst_6 = arith.constant 0.166666672 : f32
    %10 = vector.broadcast %cst_6 : f32 to vector<128x8xf32>
    %11 = arith.mulf %9, %10 : vector<128x8xf32>
    %12 = vector.extract_strided_slice %11 {offsets = [0, 0], sizes = [32, 8], strides = [1, 1]} : vector<128x8xf32> to vector<32x8xf32>
    %13 = vector.extract_strided_slice %11 {offsets = [32, 0], sizes = [32, 8], strides = [1, 1]} : vector<128x8xf32> to vector<32x8xf32>
    %14 = arith.maximumf %12, %13 : vector<32x8xf32>
    %15 = vector.extract_strided_slice %11 {offsets = [64, 0], sizes = [32, 8], strides = [1, 1]} : vector<128x8xf32> to vector<32x8xf32>
    %16 = vector.extract_strided_slice %11 {offsets = [96, 0], sizes = [32, 8], strides = [1, 1]} : vector<128x8xf32> to vector<32x8xf32>
    %17 = arith.maximumf %15, %16 : vector<32x8xf32>
    %18 = arith.maximumf %14, %17 : vector<32x8xf32>
    %c0_7 = arith.constant 0 : index
    %c0_8 = arith.constant 0 : index
    %19 = vector.load %arg2[%c0_7, %c0_8] : memref<288x32xf32, #tpu.memory_space<vmem>>, vector<288x32xf32>
    %cst_9 = arith.constant dense<0.000000e+00> : vector<288x8xf32>
    %20 = tpu.matmul %19, %18, %cst_9 {dimension_numbers = #tpu.dot_dimension_numbers<[1], [0], [0], [1], [0, 0, 1, 1], [], []>} : vector<288x32xf32>, vector<32x8xf32>, vector<288x8xf32> -> vector<288x8xf32>
    %c0_10 = arith.constant 0 : index
    %c0_11 = arith.constant 0 : index
    %21 = vector.load %arg3[%c0_10, %c0_11] : memref<9x8xf32, #tpu.memory_space<vmem>>, vector<9x8xf32>
    %22 = vector.extract_strided_slice %20 {offsets = [0, 0], sizes = [32, 8], strides = [1, 1]} : vector<288x8xf32> to vector<32x8xf32>
    %23 = vector.extract_strided_slice %21 {offsets = [0, 0], sizes = [1, 8], strides = [1, 1]} : vector<9x8xf32> to vector<1x8xf32>
    %24 = vector.broadcast %23 : vector<1x8xf32> to vector<32x8xf32>
    %25 = arith.mulf %22, %24 : vector<32x8xf32>
    %26 = vector.extract_strided_slice %20 {offsets = [32, 0], sizes = [32, 8], strides = [1, 1]} : vector<288x8xf32> to vector<32x8xf32>
    %27 = vector.extract_strided_slice %21 {offsets = [1, 0], sizes = [1, 8], strides = [1, 1]} : vector<9x8xf32> to vector<1x8xf32>
    %28 = vector.broadcast %27 : vector<1x8xf32> to vector<32x8xf32>
    %29 = arith.mulf %26, %28 : vector<32x8xf32>
    %30 = arith.addf %25, %29 : vector<32x8xf32>
    %31 = vector.extract_strided_slice %20 {offsets = [64, 0], sizes = [32, 8], strides = [1, 1]} : vector<288x8xf32> to vector<32x8xf32>
    %32 = vector.extract_strided_slice %21 {offsets = [2, 0], sizes = [1, 8], strides = [1, 1]} : vector<9x8xf32> to vector<1x8xf32>
    %33 = vector.broadcast %32 : vector<1x8xf32> to vector<32x8xf32>
    %34 = arith.mulf %31, %33 : vector<32x8xf32>
    %35 = arith.addf %30, %34 : vector<32x8xf32>
    %36 = vector.extract_strided_slice %20 {offsets = [96, 0], sizes = [32, 8], strides = [1, 1]} : vector<288x8xf32> to vector<32x8xf32>
    %37 = vector.extract_strided_slice %21 {offsets = [3, 0], sizes = [1, 8], strides = [1, 1]} : vector<9x8xf32> to vector<1x8xf32>
    %38 = vector.broadcast %37 : vector<1x8xf32> to vector<32x8xf32>
    %39 = arith.mulf %36, %38 : vector<32x8xf32>
    %40 = arith.addf %35, %39 : vector<32x8xf32>
    %41 = vector.extract_strided_slice %20 {offsets = [128, 0], sizes = [32, 8], strides = [1, 1]} : vector<288x8xf32> to vector<32x8xf32>
    %42 = vector.extract_strided_slice %21 {offsets = [4, 0], sizes = [1, 8], strides = [1, 1]} : vector<9x8xf32> to vector<1x8xf32>
    %43 = vector.broadcast %42 : vector<1x8xf32> to vector<32x8xf32>
    %44 = arith.mulf %41, %43 : vector<32x8xf32>
    %45 = arith.addf %40, %44 : vector<32x8xf32>
    %46 = vector.extract_strided_slice %20 {offsets = [160, 0], sizes = [32, 8], strides = [1, 1]} : vector<288x8xf32> to vector<32x8xf32>
    %47 = vector.extract_strided_slice %21 {offsets = [5, 0], sizes = [1, 8], strides = [1, 1]} : vector<9x8xf32> to vector<1x8xf32>
    %48 = vector.broadcast %47 : vector<1x8xf32> to vector<32x8xf32>
    %49 = arith.mulf %46, %48 : vector<32x8xf32>
    %50 = arith.addf %45, %49 : vector<32x8xf32>
    %51 = vector.extract_strided_slice %20 {offsets = [192, 0], sizes = [32, 8], strides = [1, 1]} : vector<288x8xf32> to vector<32x8xf32>
    %52 = vector.extract_strided_slice %21 {offsets = [6, 0], sizes = [1, 8], strides = [1, 1]} : vector<9x8xf32> to vector<1x8xf32>
    %53 = vector.broadcast %52 : vector<1x8xf32> to vector<32x8xf32>
    %54 = arith.mulf %51, %53 : vector<32x8xf32>
    %55 = arith.addf %50, %54 : vector<32x8xf32>
    %56 = vector.extract_strided_slice %20 {offsets = [224, 0], sizes = [32, 8], strides = [1, 1]} : vector<288x8xf32> to vector<32x8xf32>
    %57 = vector.extract_strided_slice %21 {offsets = [7, 0], sizes = [1, 8], strides = [1, 1]} : vector<9x8xf32> to vector<1x8xf32>
    %58 = vector.broadcast %57 : vector<1x8xf32> to vector<32x8xf32>
    %59 = arith.mulf %56, %58 : vector<32x8xf32>
    %60 = arith.addf %55, %59 : vector<32x8xf32>
    %61 = vector.extract_strided_slice %20 {offsets = [256, 0], sizes = [32, 8], strides = [1, 1]} : vector<288x8xf32> to vector<32x8xf32>
    %62 = vector.extract_strided_slice %21 {offsets = [8, 0], sizes = [1, 8], strides = [1, 1]} : vector<9x8xf32> to vector<1x8xf32>
    %63 = vector.broadcast %62 : vector<1x8xf32> to vector<32x8xf32>
    %64 = arith.mulf %61, %63 : vector<32x8xf32>
    %65 = arith.addf %60, %64 : vector<32x8xf32>
    %cst_12 = arith.constant 3.000000e+00 : f32
    %66 = vector.broadcast %cst_12 : f32 to vector<32x8xf32>
    %67 = arith.addf %65, %66 : vector<32x8xf32>
    %cst_13 = arith.constant 0.000000e+00 : f32
    %cst_14 = arith.constant 6.000000e+00 : f32
    %68 = vector.broadcast %cst_13 : f32 to vector<32x8xf32>
    %69 = arith.maximumf %68, %67 : vector<32x8xf32>
    %70 = vector.broadcast %cst_14 : f32 to vector<32x8xf32>
    %71 = arith.minimumf %70, %69 : vector<32x8xf32>
    %72 = arith.mulf %65, %71 : vector<32x8xf32>
    %cst_15 = arith.constant 0.166666672 : f32
    %73 = vector.broadcast %cst_15 : f32 to vector<32x8xf32>
    %74 = arith.mulf %72, %73 : vector<32x8xf32>
    %c0_16 = arith.constant 0 : index
    %c0_17 = arith.constant 0 : index
    %75 = vector.load %arg4[%c0_16, %c0_17] : memref<8x16xf32, #tpu.memory_space<vmem>>, vector<8x16xf32>
    %cst_18 = arith.constant dense<0.000000e+00> : vector<32x16xf32>
    %76 = tpu.matmul %74, %75, %cst_18 {dimension_numbers = #tpu.dot_dimension_numbers<[1], [0], [0], [1], [0, 0, 1, 1], [], []>} : vector<32x8xf32>, vector<8x16xf32>, vector<32x16xf32> -> vector<32x16xf32>
    %cst_19 = arith.constant 3.000000e+00 : f32
    %77 = vector.broadcast %cst_19 : f32 to vector<32x16xf32>
    %78 = arith.addf %76, %77 : vector<32x16xf32>
    %cst_20 = arith.constant 0.000000e+00 : f32
    %cst_21 = arith.constant 6.000000e+00 : f32
    %79 = vector.broadcast %cst_20 : f32 to vector<32x16xf32>
    %80 = arith.maximumf %79, %78 : vector<32x16xf32>
    %81 = vector.broadcast %cst_21 : f32 to vector<32x16xf32>
    %82 = arith.minimumf %81, %80 : vector<32x16xf32>
    %83 = arith.mulf %76, %82 : vector<32x16xf32>
    %cst_22 = arith.constant 0.166666672 : f32
    %84 = vector.broadcast %cst_22 : f32 to vector<32x16xf32>
    %85 = arith.mulf %83, %84 : vector<32x16xf32>
    %86 = vector.extract_strided_slice %85 {offsets = [0, 0], sizes = [8, 16], strides = [1, 1]} : vector<32x16xf32> to vector<8x16xf32>
    %87 = vector.extract_strided_slice %85 {offsets = [8, 0], sizes = [8, 16], strides = [1, 1]} : vector<32x16xf32> to vector<8x16xf32>
    %88 = arith.maximumf %86, %87 : vector<8x16xf32>
    %89 = vector.extract_strided_slice %85 {offsets = [16, 0], sizes = [8, 16], strides = [1, 1]} : vector<32x16xf32> to vector<8x16xf32>
    %90 = vector.extract_strided_slice %85 {offsets = [24, 0], sizes = [8, 16], strides = [1, 1]} : vector<32x16xf32> to vector<8x16xf32>
    %91 = arith.maximumf %89, %90 : vector<8x16xf32>
    %92 = arith.maximumf %88, %91 : vector<8x16xf32>
    %c0_23 = arith.constant 0 : index
    %c0_24 = arith.constant 0 : index
    %93 = vector.load %arg5[%c0_23, %c0_24] : memref<2x8xf32, #tpu.memory_space<vmem>>, vector<2x8xf32>
    %cst_25 = arith.constant dense<0.000000e+00> : vector<2x16xf32>
    %94 = tpu.matmul %93, %92, %cst_25 {dimension_numbers = #tpu.dot_dimension_numbers<[1], [0], [0], [1], [0, 0, 1, 1], [], []>} : vector<2x8xf32>, vector<8x16xf32>, vector<2x16xf32> -> vector<2x16xf32>
    %c0_26 = arith.constant 0 : index
    %c0_27 = arith.constant 0 : index
    %95 = vector.load %arg6[%c0_26, %c0_27] : memref<16x6xf32, #tpu.memory_space<vmem>>, vector<16x6xf32>
    %cst_28 = arith.constant dense<0.000000e+00> : vector<2x6xf32>
    %96 = tpu.matmul %94, %95, %cst_28 {dimension_numbers = #tpu.dot_dimension_numbers<[1], [0], [0], [1], [0, 0, 1, 1], [], []>} : vector<2x16xf32>, vector<16x6xf32>, vector<2x6xf32> -> vector<2x6xf32>
    %c0_29 = arith.constant 0 : index
    %c0_30 = arith.constant 0 : index
    %97 = vector.load %arg7[%c0_29, %c0_30] : memref<1x6xf32, #tpu.memory_space<vmem>>, vector<1x6xf32>
    %98 = vector.broadcast %97 : vector<1x6xf32> to vector<2x6xf32>
    %99 = arith.addf %96, %98 : vector<2x6xf32>
    %c0_31 = arith.constant 0 : index
    %c0_32 = arith.constant 0 : index
    %100 = vector.load %arg8[%c0_31, %c0_32] : memref<2x6xf32, #tpu.memory_space<vmem>>, vector<2x6xf32>
    tpu.vector_store %arg8[%c0_31, %c0_32], %99 {strides = array<i32>} : memref<2x6xf32, #tpu.memory_space<vmem>>, vector<2x6xf32>,
    return
  }
}

</mosaic_0001>

<bundles_post_ra>
// kernel: micropizza_forward.1
= control target key start
LH: loop header
LB: loop body
LE: loop exit
PB: predicated region body
PF: predicated region fallthrough
CT: control target
= control target key end

     0   :  { %vm50_vm0 = vcmask 261120   ;;  %s1776_s0 = inlined_call_operand.vmem [shape: f32[128,32], index: 0, kind: input, shape index: {}]   ;;  %s1777_s1 = inlined_call_operand.vmem [shape: f32[32,8], index: 1, kind: input, shape index: {}]   ;;  %s1778_s2 = inlined_call_operand.vmem [shape: f32[288,32], index: 2, kind: input, shape index: {}]   ;;  %s1779_s3 = inlined_call_operand.vmem [shape: f32[9,8], index: 3, kind: input, shape index: {}]   ;;  %s1780_s4 = inlined_call_operand.vmem [shape: f32[8,16], index: 4, kind: input, shape index: {}]   ;;  %s1781_s5 = inlined_call_operand.vmem [shape: f32[2,8], index: 5, kind: input, shape index: {}]   ;;  %s1782_s6 = inlined_call_operand.vmem [shape: f32[16,6], index: 6, kind: input, shape index: {}]   ;;  %s1783_s7 = inlined_call_operand.vmem [shape: f32[1,6], index: 7, kind: input, shape index: {}]   ;;  %s1784_s8 = inlined_call_operand.hbm [shape: f32[2,6], index: 8, kind: output, shape index: {}]  }
   0x1   :  { %v46_v0 = vld [vmem:[%s1777_s1] sm:$0xff]  ;;  %v47_v1 = vld [vmem:[%s1777_s1 + $0x8] sm:$0xff]  ;;  %v48_v2 = vld [vmem:[%s1777_s1 + $0x10] sm:$0xff] }
   0x2   :  { %v1390_v3 = vpack.c.bf16 %v47_v1, %v46_v0  ;;  %v49_v4 = vld [vmem:[%s1777_s1 + $0x18] sm:$0xff]  ;;  %v30_v5 = vld [vmem:[%s1776_s0] sm:$0xff] }
   0x3   :  { %v1394_v6 = vpack.c.bf16 %v49_v4, %v48_v2  ;;  %1284 = vmatprep.mubr.msk.f32.mxu0 %vm50_vm0, %v30_v5 }
   0x4   :  { %1391 = vmatprep.subr.bf16.mxu0 %v1390_v3 }
   0x5   :  { %1393 = vmatpush3.bf16.msra.mxu0 %v1390_v3 }
   0x6   :  { %1395 = vmatprep.subr.bf16.mxu0 %v1394_v6 }
   0x7   :  { %13 = vsyncpa [#allocation3], 0  ;;  %v31_v7 = vld [vmem:[%s1776_s0 + $0x8] sm:$0xff]  ;;  %v32_v8 = vld [vmem:[%s1776_s0 + $0x10] sm:$0xff]  ;;  %vm852_vm1 = vcmask 64512   ;;  %vm1442_vm2 = vmmov 0  }
   0x8   :  { %v33_v9 = vld [vmem:[%s1776_s0 + $0x18] sm:$0xff]  ;;  %v34_v10 = vld [vmem:[%s1776_s0 + $0x20] sm:$0xff]  ;;  %v35_v11 = vld [vmem:[%s1776_s0 + $0x28] sm:$0xff]  ;;  %vm1056_vm3 = vcmask 130048   ;;  %s1444_s30 = smov [#allocation2]   ;;  %vm1130_vm4 = vcmask 41984  }
   0x9   :  { %1397 = vmatpush3.bf16.msra.mxu0 %v1394_v6  ;;  %v36_v12 = vld [vmem:[%s1776_s0 + $0x30] sm:$0xff]  ;;  %v37_v13 = vld [vmem:[%s1776_s0 + $0x38] sm:$0xff]  ;;  %v38_v14 = vld [vmem:[%s1776_s0 + $0x40] sm:$0xff]  ;;  %s1138_s9 = sshll.u32 %s1444_s30, 4  ;;  %s1139_s9 = int_to_ptr.vmem [resolvable:$true] %s1138_s9 }
   0xa   :  { %v39_v15 = vld [vmem:[%s1776_s0 + $0x48] sm:$0xff]  ;;  %v40_v16 = vld [vmem:[%s1776_s0 + $0x50] sm:$0xff]  ;;  %v41_v17 = vld [vmem:[%s1776_s0 + $0x58] sm:$0xff]  ;;  %p1422_p1 = scmp.lt.s32.totalorder %s1139_s9, %s1139_s9 }
   0xb   :  { %v42_v18 = vld [vmem:[%s1776_s0 + $0x60] sm:$0xff]  ;;  %v43_v19 = vld [vmem:[%s1776_s0 + $0x68] sm:$0xff]  ;;  %v44_v20 = vld [vmem:[%s1776_s0 + $0x70] sm:$0xff] }
   0xc   :  { %1285 = vmatmul.mubr.msk.f32.vlgmr.msra.gmra.mrb[0].mxu0 %vm50_vm0, %v31_v7  ;;  %v45_v21 = vld [vmem:[%s1776_s0 + $0x78] sm:$0xff]  ;;  %v336_v22 = vld [vmem:[%s1778_s2] sm:$0xff]  ;;  %v342_v23 = vld [vmem:[%s1778_s2 + $0x30] sm:$0xff] }
   0xd   :  { %1287 = vmatprep.mubr.msk.f32.mxu0 %vm50_vm0, %v32_v8  ;;  %1325 = vmatprep.mubr.msk.f32.mxu1 %vm50_vm0, %v342_v23 }
  0x10   :  { %1288 = vmatmul.mubr.msk.f32.gmra.mrb[2].mxu0 %vm50_vm0, %v33_v9 }
  0x11   :  { %1290 = vmatprep.mubr.msk.f32.mxu0 %vm50_vm0, %v34_v10 }
  0x14   :  { %1291 = vmatmul.mubr.msk.f32.gmra.mrb[4].mxu0 %vm50_vm0, %v35_v11 }
  0x15   :  { %1293 = vmatprep.mubr.msk.f32.mxu0 %vm50_vm0, %v36_v12 }
  0x18   :  { %1294 = vmatmul.mubr.msk.f32.gmra.mrb[6].mxu0 %vm50_vm0, %v37_v13 }
  0x19   :  { %1296 = vmatprep.mubr.msk.f32.mxu0 %vm50_vm0, %v38_v14 }
  0x1c   :  { %1297 = vmatmul.mubr.msk.f32.gmra.mrb[8].mxu0 %vm50_vm0, %v39_v15 }
  0x1d   :  { %1299 = vmatprep.mubr.msk.f32.mxu0 %vm50_vm0, %v40_v16 }
  0x20   :  { %1300 = vmatmul.mubr.msk.f32.gmra.mrb[10].mxu0 %vm50_vm0, %v41_v17 }
  0x21   :  { %1302 = vmatprep.mubr.msk.f32.mxu0 %vm50_vm0, %v42_v18 }
  0x24   :  { %1303 = vmatmul.mubr.msk.f32.gmra.mrb[12].mxu0 %vm50_vm0, %v43_v19 }
  0x25   :  { %1305 = vmatprep.mubr.msk.f32.mxu0 %vm50_vm0, %v44_v20 }
  0x28   :  { %1306 = vmatmul.mubr.msk.f32.gmra.mrb[14].mxu0 %vm50_vm0, %v45_v21 }
  0x29   :  { %1316 = vmatprep.mubr.msk.f32.mxu0 %vm50_vm0, %v336_v22 }
  0xdf   :  { %v1286_v24 = vpop.f32.mrb[0].mxu0 }
  0xe0   :  { %v245_v25 = vadd.f32 3.0, %v1286_v24  ;;  %v165_v26 = vpop.f32.mrb[1].mxu0 }
  0xe1   :  { %v244_v27 = vadd.f32 3.0, %v165_v26 }
  0xe2   :  { %v261_v28 = vmax.f32 %v245_v25, 0.0 }
  0xe3   :  { %v260_v29 = vmax.f32 %v244_v27, 0.0  ;;  %v1289_v30 = vpop.f32.mrb[2].mxu0 }
  0xe4   :  { %v247_v31 = vadd.f32 3.0, %v1289_v30  ;;  %v175_v32 = vpop.f32.mrb[3].mxu0  ;;  %v277_v34 = vmin.f32 %v261_v28, 6.0 }
  0xe5   :  { %v246_v33 = vadd.f32 3.0, %v175_v32  ;;  %v276_v35 = vmin.f32 %v260_v29, 6.0 }
  0xe6   :  { %v263_v36 = vmax.f32 %v247_v31, 0.0  ;;  %v293_v42 = vmul.f32 %v1286_v24, %v277_v34 }
  0xe7   :  { %v1292_v37 = vpop.f32.mrb[4].mxu0  ;;  %v262_v40 = vmax.f32 %v246_v33, 0.0  ;;  %v292_v44 = vmul.f32 %v276_v35, %v165_v26 }
  0xe8   :  { %v249_v38 = vadd.f32 3.0, %v1292_v37  ;;  %v185_v39 = vpop.f32.mrb[5].mxu0  ;;  %v279_v45 = vmin.f32 %v263_v36, 6.0  ;;  %v1574_v54 = vmul.f32 0.16666667, %v293_v42 }
  0xe9   :  { %v248_v41 = vadd.f32 3.0, %v185_v39  ;;  %v278_v51 = vmin.f32 %v262_v40, 6.0  ;;  %v1576_v57 = vmul.f32 0.16666667, %v292_v44 }
  0xea   :  { %v265_v43 = vmax.f32 %v249_v38, 0.0  ;;  %v295_v58 = vmul.f32 %v1289_v30, %v279_v45 }
  0xeb   :  { %v264_v46 = vmax.f32 %v248_v41, 0.0  ;;  %v1295_v47 = vpop.f32.mrb[6].mxu0  ;;  %v294_v2 = vmul.f32 %v278_v51, %v175_v32 }
  0xec   :  { %v281_v48 = vmin.f32 %v265_v43, 6.0  ;;  %v251_v49 = vadd.f32 3.0, %v1295_v47  ;;  %v195_v50 = vpop.f32.mrb[7].mxu0  ;;  %v311_v8 = vmul.f32 0.16666667, %v295_v58 }
  0xed   :  { %v280_v52 = vmin.f32 %v264_v46, 6.0  ;;  %v250_v53 = vadd.f32 3.0, %v195_v50  ;;  %v310_v16 = vmul.f32 0.16666667, %v294_v2 }
  0xee   :  { %v297_v55 = vmul.f32 %v1292_v37, %v281_v48  ;;  %v267_v56 = vmax.f32 %v251_v49, 0.0 }
  0xef   :  { %v296_v59 = vmul.f32 %v280_v52, %v185_v39  ;;  %v266_v60 = vmax.f32 %v250_v53, 0.0  ;;  %v1298_v61 = vpop.f32.mrb[8].mxu0 }
  0xf0   :  { %v313_v62 = vmul.f32 0.16666667, %v297_v55  ;;  %v283_v63 = vmin.f32 %v267_v56, 6.0  ;;  %v253_v0 = vadd.f32 3.0, %v1298_v61  ;;  %v205_v1 = vpop.f32.mrb[9].mxu0 }
  0xf1   :  { %v312_v3 = vmul.f32 0.16666667, %v296_v59  ;;  %v282_v4 = vmin.f32 %v266_v60, 6.0  ;;  %v252_v5 = vadd.f32 3.0, %v205_v1 }
  0xf2   :  { %v325_v6 = vmax.f32 %v1574_v54, %v313_v62  ;;  %v299_v7 = vmul.f32 %v1295_v47, %v283_v63  ;;  %v269_v13 = vmax.f32 %v253_v0, 0.0 }
  0xf3   :  { %v324_v9 = vmax.f32 %v1576_v57, %v312_v3  ;;  %v298_v10 = vmul.f32 %v282_v4, %v195_v50  ;;  %v1301_v11 = vpop.f32.mrb[10].mxu0  ;;  %v268_v18 = vmax.f32 %v252_v5, 0.0 }
  0xf4   :  { %v315_v12 = vmul.f32 0.16666667, %v299_v7  ;;  %v255_v14 = vadd.f32 3.0, %v1301_v11  ;;  %v215_v15 = vpop.f32.mrb[11].mxu0  ;;  %v285_v23 = vmin.f32 %v269_v13, 6.0  ;;  %v343_v7 = vld [vmem:[%s1778_s2 + $0x38] sm:$0xff] }
  0xf5   :  { %v314_v17 = vmul.f32 0.16666667, %v298_v10  ;;  %v254_v19 = vadd.f32 3.0, %v215_v15  ;;  %v284_v27 = vmin.f32 %v268_v18, 6.0  ;;  %v339_v10 = vld [vmem:[%s1778_s2 + $0x18] sm:$0xff]  ;;  %v346_v13 = vld [vmem:[%s1778_s2 + $0x50] sm:$0xff] }
  0xf6   :  { %v327_v20 = vmax.f32 %v311_v8, %v315_v12  ;;  %v271_v24 = vmax.f32 %v255_v14, 0.0  ;;  %v301_v33 = vmul.f32 %v1298_v61, %v285_v23  ;;  %v338_v8 = vld [vmem:[%s1778_s2 + $0x10] sm:$0xff]  ;;  %v340_v12 = vld [vmem:[%s1778_s2 + $0x20] sm:$0xff]  ;;  %v341_v14 = vld [vmem:[%s1778_s2 + $0x28] sm:$0xff] }
  0xf7   :  { %v326_v21 = vmax.f32 %v310_v16, %v314_v17  ;;  %v1304_v22 = vpop.f32.mrb[12].mxu0  ;;  %v270_v28 = vmax.f32 %v254_v19, 0.0  ;;  %v300_v38 = vmul.f32 %v284_v27, %v205_v1  ;;  %v348_v16 = vld [vmem:[%s1778_s2 + $0x60] sm:$0xff]  ;;  %v349_v17 = vld [vmem:[%s1778_s2 + $0x68] sm:$0xff]  ;;  %v350_v18 = vld [vmem:[%s1778_s2 + $0x70] sm:$0xff] }
  0xf8   :  { %v257_v25 = vadd.f32 3.0, %v1304_v22  ;;  %v225_v26 = vpop.f32.mrb[13].mxu0  ;;  %v287_v34 = vmin.f32 %v271_v24, 6.0  ;;  %v317_v46 = vmul.f32 0.16666667, %v301_v33  ;;  %v351_v19 = vld [vmem:[%s1778_s2 + $0x78] sm:$0xff] }
  0xf9   :  { %v256_v29 = vadd.f32 3.0, %v225_v26  ;;  %v286_v39 = vmin.f32 %v270_v28, 6.0  ;;  %v316_v50 = vmul.f32 0.16666667, %v300_v38  ;;  %v355_v23 = vld [vmem:[%s1778_s2 + $0x98] sm:$0xff]  ;;  %v356_v24 = vld [vmem:[%s1778_s2 + $0xa0] sm:$0xff] }
  0xfa   :  { %v273_v30 = vmax.f32 %v257_v25, 0.0  ;;  %v303_v47 = vmul.f32 %v1301_v11, %v287_v34  ;;  %v345_v11 = vld [vmem:[%s1778_s2 + $0x48] sm:$0xff]  ;;  %v359_v27 = vld [vmem:[%s1778_s2 + $0xb8] sm:$0xff]  ;;  %v360_v28 = vld [vmem:[%s1778_s2 + $0xc0] sm:$0xff] }
  0xfb   :  { %v272_v31 = vmax.f32 %v256_v29, 0.0  ;;  %v1307_v32 = vpop.f32.mrb[14].mxu0  ;;  %v302_v51 = vmul.f32 %v286_v39, %v215_v15  ;;  %v347_v15 = vld [vmem:[%s1778_s2 + $0x58] sm:$0xff]  ;;  %v357_v25 = vld [vmem:[%s1778_s2 + $0xa8] sm:$0xff]  ;;  %v366_v34 = vld [vmem:[%s1778_s2 + $0xf0] sm:$0xff] }
  0xfc   :  { %v289_v35 = vmin.f32 %v273_v30, 6.0  ;;  %v259_v36 = vadd.f32 3.0, %v1307_v32  ;;  %v235_v37 = vpop.f32.mrb[15].mxu0  ;;  %v319_v58 = vmul.f32 0.16666667, %v303_v47  ;;  %v361_v29 = vld [vmem:[%s1778_s2 + $0xc8] sm:$0xff] }
  0xfd   :  { %v288_v40 = vmin.f32 %v272_v31, 6.0  ;;  %v258_v41 = vadd.f32 3.0, %v235_v37  ;;  %v318_v61 = vmul.f32 0.16666667, %v302_v51  ;;  %v362_v30 = vld [vmem:[%s1778_s2 + $0xd0] sm:$0xff]  ;;  %v363_v31 = vld [vmem:[%s1778_s2 + $0xd8] sm:$0xff] }
  0xfe   :  { %v305_v42 = vmul.f32 %v1304_v22, %v289_v35  ;;  %v275_v43 = vmax.f32 %v259_v36, 0.0  ;;  %v354_v22 = vld [vmem:[%s1778_s2 + $0x90] sm:$0xff]  ;;  %v365_v33 = vld [vmem:[%s1778_s2 + $0xe8] sm:$0xff]  ;;  %v367_v35 = vld [vmem:[%s1778_s2 + $0xf8] sm:$0xff] }
  0xff   :  { %v304_v44 = vmul.f32 %v288_v40, %v225_v26  ;;  %v274_v45 = vmax.f32 %v258_v41, 0.0  ;;  %v358_v26 = vld [vmem:[%s1778_s2 + $0xb0] sm:$0xff]  ;;  %v368_v36 = vld [vmem:[%s1778_s2 + $0x100] sm:$0xff]  ;;  %v371_v39 = vld [vmem:[%s1778_s2 + $0x118] sm:$0xff]  ;;  %v727_v41 = vlaneseq }
 0x100   :  { %v321_v48 = vmul.f32 0.16666667, %v305_v42  ;;  %v291_v49 = vmin.f32 %v275_v43, 6.0  ;;  %v370_v38 = vld [vmem:[%s1778_s2 + $0x110] sm:$0xff]  ;;  %v851_v40 = vld [vmem:[%s1780_s4] sm:$0xff] }
 0x101   :  { %v320_v52 = vmul.f32 0.16666667, %v304_v44  ;;  %v290_v53 = vmin.f32 %v274_v45, 6.0  ;;  %v1719_v42 = vshrl.u32 %v727_v41, 7  ;;  %v1726_v45 = vld [vmem:[%s1779_s3] sm:$0xff] }
 0x102   :  { %v329_v54 = vmax.f32 %v317_v46, %v321_v48  ;;  %v307_v55 = vmul.f32 %v1307_v32, %v291_v49  ;;  %v364_v32 = vld [vmem:[%s1778_s2 + $0xe0] sm:$0xff] }
 0x103   :  { %v328_v56 = vmax.f32 %v316_v50, %v320_v52  ;;  %v306_v57 = vmul.f32 %v290_v53, %v235_v37  ;;  %v369_v37 = vld [vmem:[%s1778_s2 + $0x108] sm:$0xff]  ;;  %v737_v43 = vsub.s32 1, %v1719_v42  ;;  %v729_v44 = vsub.s32 0, %v1719_v42 }
 0x104   :  { %v333_v59 = vmax.f32 %v325_v6, %v329_v54  ;;  %v323_v60 = vmul.f32 0.16666667, %v307_v55  ;;  %v337_v6 = vld [vmem:[%s1778_s2 + $0x8] sm:$0xff]  ;;  %v749_v52 = vsub.s32 2, %v1719_v42 }
 0x105   :  { %v332_v62 = vmax.f32 %v324_v9, %v328_v56  ;;  %v322_v63 = vmul.f32 0.16666667, %v306_v57  ;;  %v344_v9 = vld [vmem:[%s1778_s2 + $0x40] sm:$0xff]  ;;  %v738_v48 = vrot.slane %v1726_v45, %v737_v43  ;;  %v730_v50 = vrot.slane %v1726_v45, %v729_v44 }
 0x106   :  { %v331_v0 = vmax.f32 %v319_v58, %v323_v60 }
 0x107   :  { %v330_v1 = vmax.f32 %v318_v61, %v322_v63  ;;  %v1398_v2 = vpack.c.bf16 %v333_v59, %v332_v62  ;;  %v761_v59 = vsub.s32 3, %v1719_v42 }
 0x108   :  { %v335_v3 = vmax.f32 %v327_v20, %v331_v0  ;;  %v352_v20 = vld [vmem:[%s1778_s2 + $0x80] sm:$0xff]  ;;  %v750_v0 = vrot.slane %v1726_v45, %v749_v52 }
 0x109   :  { %v334_v4 = vmax.f32 %v326_v21, %v330_v1  ;;  %1399 = vmatprep.subr.bf16.mxu0 %v1398_v2  ;;  %1409 = vmatprep.subr.bf16.mxu1 %v1398_v2  ;;  %v353_v21 = vld [vmem:[%s1778_s2 + $0x88] sm:$0xff] }
 0x10a   :  { %1401 = vmatpush3.bf16.msra.mxu0 %v1398_v2  ;;  %1411 = vmatpush3.bf16.msra.mxu1 %v1398_v2 }
 0x10b   :  { %v1402_v5 = vpack.c.bf16 %v335_v3, %v334_v4 }
 0x10d   :  { %1403 = vmatprep.subr.bf16.mxu0 %v1402_v5  ;;  %1410 = vmatprep.subr.bf16.mxu1 %v1402_v5 }
 0x10e   :  { %1405 = vmatpush3.bf16.msra.mxu0 %v1402_v5  ;;  %1412 = vmatpush3.bf16.msra.mxu1 %v1402_v5 }
 0x10f   :  { %1370 = vmatprep.subr.mxu0 %v851_v40 }
 0x111   :  { %1317 = vmatmul.mubr.msk.f32.vlgmr.msra.gmra.mrb[16].mxu0 %vm50_vm0, %v337_v6  ;;  %1326 = vmatmul.mubr.msk.f32.vlgmr.msra.gmra.mrb[0].mxu1 %vm50_vm0, %v343_v7 }
 0x112   :  { %1319 = vmatprep.mubr.msk.f32.mxu0 %vm50_vm0, %v338_v8  ;;  %1328 = vmatprep.mubr.msk.f32.mxu1 %vm50_vm0, %v344_v9  ;;  %v762_v9 = vrot.slane %v1726_v45, %v761_v59 }
 0x113   :  { %1371 = vmatpush3.msra.mxu0 %v851_v40 }
 0x115   :  { %1320 = vmatmul.mubr.msk.f32.gmra.mrb[18].mxu0 %vm50_vm0, %v339_v10  ;;  %1329 = vmatmul.mubr.msk.f32.gmra.mrb[2].mxu1 %vm50_vm0, %v345_v11 }
 0x116   :  { %1322 = vmatprep.mubr.msk.f32.mxu0 %vm50_vm0, %v340_v12  ;;  %1331 = vmatprep.mubr.msk.f32.mxu1 %vm50_vm0, %v346_v13 }
 0x119   :  { %1323 = vmatmul.mubr.msk.f32.gmra.mrb[20].mxu0 %vm50_vm0, %v341_v14  ;;  %1332 = vmatmul.mubr.msk.f32.gmra.mrb[4].mxu1 %vm50_vm0, %v347_v15 }
 0x11a   :  { %1334 = vmatprep.mubr.msk.f32.mxu1 %vm50_vm0, %v348_v16 }
 0x11d   :  { %1335 = vmatmul.mubr.msk.f32.gmra.mrb[6].mxu1 %vm50_vm0, %v349_v17 }
 0x11e   :  { %1337 = vmatprep.mubr.msk.f32.mxu1 %vm50_vm0, %v350_v18 }
 0x121   :  { %1338 = vmatmul.mubr.msk.f32.gmra.mrb[8].mxu1 %vm50_vm0, %v351_v19 }
 0x122   :  { %1340 = vmatprep.mubr.msk.f32.mxu1 %vm50_vm0, %v352_v20 }
 0x125   :  { %1341 = vmatmul.mubr.msk.f32.gmra.mrb[10].mxu1 %vm50_vm0, %v353_v21 }
 0x126   :  { %1343 = vmatprep.mubr.msk.f32.mxu1 %vm50_vm0, %v354_v22  ;;  %v773_v22 = vsub.s32 4, %v1719_v42 }
 0x129   :  { %1344 = vmatmul.mubr.msk.f32.gmra.mrb[12].mxu1 %vm50_vm0, %v355_v23 }
 0x12a   :  { %1346 = vmatprep.mubr.msk.f32.mxu1 %vm50_vm0, %v356_v24 }
 0x12d   :  { %1347 = vmatmul.mubr.msk.f32.gmra.mrb[14].mxu1 %vm50_vm0, %v357_v25 }
 0x12e   :  { %1349 = vmatprep.mubr.msk.f32.mxu1 %vm50_vm0, %v358_v26 }
 0x131   :  { %1350 = vmatmul.mubr.msk.f32.gmra.mrb[16].mxu1 %vm50_vm0, %v359_v27 }
 0x132   :  { %1352 = vmatprep.mubr.msk.f32.mxu1 %vm50_vm0, %v360_v28 }
 0x135   :  { %1353 = vmatmul.mubr.msk.f32.gmra.mrb[18].mxu1 %vm50_vm0, %v361_v29 }
 0x136   :  { %1355 = vmatprep.mubr.msk.f32.mxu1 %vm50_vm0, %v362_v30  ;;  %v774_v30 = vrot.slane %v1726_v45, %v773_v22 }
 0x139   :  { %1356 = vmatmul.mubr.msk.f32.gmra.mrb[20].mxu1 %vm50_vm0, %v363_v31 }
 0x13a   :  { %1358 = vmatprep.mubr.msk.f32.mxu1 %vm50_vm0, %v364_v32 }
 0x13d   :  { %1359 = vmatmul.mubr.msk.f32.gmra.mrb[22].mxu1 %vm50_vm0, %v365_v33 }
 0x13e   :  { %1361 = vmatprep.mubr.msk.f32.mxu1 %vm50_vm0, %v366_v34 }
 0x141   :  { %1362 = vmatmul.mubr.msk.f32.gmra.mrb[24].mxu1 %vm50_vm0, %v367_v35 }
 0x142   :  { %1364 = vmatprep.mubr.msk.f32.mxu1 %vm50_vm0, %v368_v36 }
 0x145   :  { %1365 = vmatmul.mubr.msk.f32.gmra.mrb[26].mxu1 %vm50_vm0, %v369_v37  ;;  %v785_v37 = vsub.s32 5, %v1719_v42 }
 0x146   :  { %1367 = vmatprep.mubr.msk.f32.mxu1 %vm50_vm0, %v370_v38 }
 0x149   :  { %1368 = vmatmul.mubr.msk.f32.gmra.mrb[28].mxu1 %vm50_vm0, %v371_v39 }
 0x1e4   :  { %v1327_v46 = vpop.f32.mrb[0].mxu1  ;;  %v1318_v47 = vpop.f32.mrb[16].mxu0 }
 0x1e5   :  { %v576_v49 = vpop.f32.mrb[1].mxu1  ;;  %v546_v51 = vpop.f32.mrb[17].mxu0  ;;  %v742_v55 = vmul.f32 %v1327_v46, %v738_v48  ;;  %v732_v62 = vmul.f32 %v1318_v47, %v730_v50  ;;  %v786_v46 = vrot.slane %v1726_v45, %v785_v37 }
 0x1e6   :  { %v741_v60 = vmul.f32 %v738_v48, %v576_v49  ;;  %v731_v1 = vmul.f32 %v730_v50, %v546_v51 }
 0x1e8   :  { %v1321_v53 = vpop.f32.mrb[18].mxu0  ;;  %v1330_v54 = vpop.f32.mrb[2].mxu1 }
 0x1e9   :  { %v734_v56 = vmul.f32 %v1321_v53, %v730_v50  ;;  %v556_v57 = vpop.f32.mrb[19].mxu0  ;;  %v586_v58 = vpop.f32.mrb[3].mxu1  ;;  %v752_v12 = vmul.f32 %v1330_v54, %v750_v0  ;;  %v797_v53 = vsub.s32 6, %v1719_v42 }
 0x1ea   :  { %v733_v61 = vmul.f32 %v730_v50, %v556_v57  ;;  %v751_v15 = vmul.f32 %v750_v0, %v586_v58 }
 0x1eb   :  { %v746_v63 = vadd.f32 %v742_v55, %v734_v56 }
 0x1ec   :  { %v745_v2 = vadd.f32 %v741_v60, %v733_v61  ;;  %v1324_v3 = vpop.f32.mrb[20].mxu0  ;;  %v1333_v4 = vpop.f32.mrb[4].mxu1  ;;  %v798_v60 = vrot.slane %v1726_v45, %v797_v53 }
 0x1ed   :  { %v740_v5 = vmul.f32 %v1324_v3, %v738_v48  ;;  %v754_v6 = vmul.f32 %v1333_v4, %v750_v0  ;;  %v566_v7 = vpop.f32.mrb[21].mxu0  ;;  %v596_v8 = vpop.f32.mrb[5].mxu1  ;;  %v809_v3 = vsub.s32 7, %v1719_v42 }
 0x1ee   :  { %v739_v10 = vmul.f32 %v738_v48, %v566_v7  ;;  %v753_v11 = vmul.f32 %v750_v0, %v596_v8 }
 0x1ef   :  { %v744_v13 = vadd.f32 %v740_v5, %v732_v62  ;;  %v758_v14 = vadd.f32 %v754_v6, %v746_v63 }
 0x1f0   :  { %v743_v16 = vadd.f32 %v739_v10, %v731_v1  ;;  %v757_v17 = vadd.f32 %v753_v11, %v745_v2  ;;  %v1336_v18 = vpop.f32.mrb[6].mxu1  ;;  %v810_v10 = vrot.slane %v1726_v45, %v809_v3 }
 0x1f1   :  { %v756_v19 = vadd.f32 %v752_v12, %v744_v13  ;;  %v764_v20 = vmul.f32 %v1336_v18, %v762_v9  ;;  %v606_v21 = vpop.f32.mrb[7].mxu1 }
 0x1f2   :  { %v755_v23 = vadd.f32 %v751_v15, %v743_v16  ;;  %v763_v24 = vmul.f32 %v762_v9, %v606_v21 }
 0x1f3   :  { %v768_v25 = vadd.f32 %v764_v20, %v756_v19 }
 0x1f4   :  { %v767_v26 = vadd.f32 %v763_v24, %v755_v23  ;;  %v1339_v27 = vpop.f32.mrb[8].mxu1  ;;  %v1198_v23 = vld [vmem:[%s1779_s3 + $0x8] ss:$0 sm:$0xff] }
 0x1f5   :  { %v766_v28 = vmul.f32 %v1339_v27, %v762_v9  ;;  %v616_v29 = vpop.f32.mrb[9].mxu1 }
 0x1f6   :  { %v765_v31 = vmul.f32 %v762_v9, %v616_v29 }
 0x1f7   :  { %v770_v32 = vadd.f32 %v766_v28, %v758_v14 }
 0x1f8   :  { %v769_v33 = vadd.f32 %v765_v31, %v757_v17  ;;  %v1342_v34 = vpop.f32.mrb[10].mxu1 }
 0x1f9   :  { %v776_v35 = vmul.f32 %v1342_v34, %v774_v30  ;;  %v626_v36 = vpop.f32.mrb[11].mxu1 }
 0x1fa   :  { %v775_v38 = vmul.f32 %v774_v30, %v626_v36 }
 0x1fb   :  { %v780_v39 = vadd.f32 %v776_v35, %v768_v25 }
 0x1fc   :  { %v779_v40 = vadd.f32 %v775_v38, %v767_v26  ;;  %v1345_v41 = vpop.f32.mrb[12].mxu1 }
 0x1fd   :  { %v778_v43 = vmul.f32 %v1345_v41, %v774_v30  ;;  %v636_v44 = vpop.f32.mrb[13].mxu1 }
 0x1fe   :  { %v777_v47 = vmul.f32 %v774_v30, %v636_v44 }
 0x1ff   :  { %v782_v48 = vadd.f32 %v778_v43, %v770_v32 }
 0x200   :  { %v781_v49 = vadd.f32 %v777_v47, %v769_v33  ;;  %v1348_v50 = vpop.f32.mrb[14].mxu1 }
 0x201   :  { %v788_v51 = vmul.f32 %v1348_v50, %v786_v46  ;;  %v646_v52 = vpop.f32.mrb[15].mxu1 }
 0x202   :  { %v787_v54 = vmul.f32 %v786_v46, %v646_v52 }
 0x203   :  { %v792_v55 = vadd.f32 %v788_v51, %v780_v39 }
 0x204   :  { %v791_v56 = vadd.f32 %v787_v54, %v779_v40  ;;  %v1351_v57 = vpop.f32.mrb[16].mxu1 }
 0x205   :  { %v790_v58 = vmul.f32 %v1351_v57, %v786_v46  ;;  %v656_v59 = vpop.f32.mrb[17].mxu1 }
 0x206   :  { %v789_v61 = vmul.f32 %v786_v46, %v656_v59  ;;  %v1441_v59 = vmov 0.0  }
 0x207   :  { %v794_v62 = vadd.f32 %v790_v58, %v782_v48  ;;  %1378 = vmatprep.subr.mxu0 %v1441_v59 }
 0x208   :  { %v793_v63 = vadd.f32 %v789_v61, %v781_v49  ;;  %v1354_v0 = vpop.f32.mrb[18].mxu1 }
 0x209   :  { %v800_v1 = vmul.f32 %v1354_v0, %v798_v60  ;;  %v666_v2 = vpop.f32.mrb[19].mxu1 }
 0x20a   :  { %v799_v4 = vmul.f32 %v798_v60, %v666_v2 }
 0x20b   :  { %v804_v5 = vadd.f32 %v800_v1, %v792_v55 }
 0x20c   :  { %v803_v6 = vadd.f32 %v799_v4, %v791_v56  ;;  %v1357_v7 = vpop.f32.mrb[20].mxu1 }
 0x20d   :  { %v802_v8 = vmul.f32 %v1357_v7, %v798_v60  ;;  %v676_v9 = vpop.f32.mrb[21].mxu1 }
 0x20e   :  { %v801_v11 = vmul.f32 %v798_v60, %v676_v9 }
 0x20f   :  { %v806_v12 = vadd.f32 %v802_v8, %v794_v62 }
 0x210   :  { %v805_v13 = vadd.f32 %v801_v11, %v793_v63  ;;  %v1360_v14 = vpop.f32.mrb[22].mxu1 }
 0x211   :  { %v812_v15 = vmul.f32 %v1360_v14, %v810_v10  ;;  %v686_v16 = vpop.f32.mrb[23].mxu1 }
 0x212   :  { %v811_v17 = vmul.f32 %v810_v10, %v686_v16 }
 0x213   :  { %v816_v18 = vadd.f32 %v812_v15, %v804_v5 }
 0x214   :  { %v815_v19 = vadd.f32 %v811_v17, %v803_v6  ;;  %v1363_v20 = vpop.f32.mrb[24].mxu1 }
 0x215   :  { %v814_v21 = vmul.f32 %v1363_v20, %v810_v10  ;;  %v696_v42 = vpop.f32.mrb[25].mxu1 }
 0x216   :  { %v813_v22 = vmul.f32 %v810_v10, %v696_v42  ;;  %v1048_v42 = vld [vmem:[%s1782_s6 + $0x8] sm:$0xff] }
 0x217   :  { %v818_v24 = vadd.f32 %v814_v21, %v806_v12  ;;  %v1047_v21 = vld [vmem:[%s1782_s6] sm:$0xff] }
 0x218   :  { %v817_v25 = vadd.f32 %v813_v22, %v805_v13  ;;  %v1366_v45 = vpop.f32.mrb[26].mxu1 }
 0x219   :  { %v824_v26 = vmul.f32 %v1366_v45, %v1198_v23  ;;  %v706_v27 = vpop.f32.mrb[27].mxu1  ;;  %v1443_v45 = vmov 0.0|0.0  }
 0x21a   :  { %v823_v28 = vmul.f32 %v1198_v23, %v706_v27 }
 0x21b   :  { %v828_v29 = vadd.f32 %v824_v26, %v816_v18 }
 0x21c   :  { %v827_v30 = vadd.f32 %v823_v28, %v815_v19  ;;  %v1369_v31 = vpop.f32.mrb[28].mxu1  ;;  %v1204_v28 = vld [vmem:[%s1783_s7] ss:$0 sm:$0xff] }
 0x21d   :  { %v832_v32 = vadd.f32 3.0, %v828_v29  ;;  %v826_v33 = vmul.f32 %v1369_v31, %v1198_v23  ;;  %v716_v34 = vpop.f32.mrb[29].mxu1 }
 0x21e   :  { %v831_v35 = vadd.f32 3.0, %v827_v30  ;;  %v825_v36 = vmul.f32 %v1198_v23, %v716_v34 }
 0x21f   :  { %v836_v37 = vmax.f32 %v832_v32, 0.0  ;;  %v830_v38 = vadd.f32 %v826_v33, %v818_v24  ;;  %v973_v24 = vld [vmem:[%s1781_s5] sm:$0x3]  ;;  %s1417_s5 = scalar_lea.vmem %s1139_s9, 32 }
 0x220   :  { %v835_v39 = vmax.f32 %v831_v35, 0.0  ;;  %v829_v40 = vadd.f32 %v825_v36, %v817_v25  ;;  %v1407_v25 = vpack.c.bf16 %v1048_v42, %v1047_v21  ;;  %p1418_p0 = scmp.ne.s32.totalorder %s1139_s9, %s1417_s5  ;;  %p1423_p2 = scmp.lt.s32.totalorder %s1417_s5, %s1417_s5 }
 0x221   :  { %v840_v41 = vmin.f32 %v836_v37, 6.0  ;;  %v834_v43 = vadd.f32 3.0, %v830_v38 }
 0x222   :  { %v839_v44 = vmin.f32 %v835_v39, 6.0  ;;  %v833_v46 = vadd.f32 3.0, %v829_v40  ;;  %p1424_p3 = por %p1423_p2, %p1422_p1 }
 0x223   :  { %v844_v47 = vmul.f32 %v840_v41, %v828_v29  ;;  %v838_v48 = vmax.f32 %v834_v43, 0.0 }
 0x224   :  { %v843_v49 = vmul.f32 %v839_v44, %v827_v30  ;;  %v837_v50 = vmax.f32 %v833_v46, 0.0  ;;  %p1425_p4 = pnand %p1424_p3, %p1418_p0 }
 0x225   :  { %v842_v51 = vmin.f32 %v838_v48, 6.0  ;;  %v848_v54 = vmul.f32 0.16666667, %v844_v47 }
 0x226   :  { %v847_v52 = vmul.f32 0.16666667, %v843_v49  ;;  %v841_v53 = vmin.f32 %v837_v50, 6.0 }
 0x227   :  { %v846_v55 = vmul.f32 %v842_v51, %v830_v38 }
 0x228   :  { %v845_v56 = vmul.f32 %v841_v53, %v829_v40  ;;  %1372 = vmatprep.mubr.msk.f32.mxu0 %vm852_vm1, %v847_v52 }
 0x229   :  { %1373 = vmatmul.mubr.msk.f32.vlgmr.msra.gmra.mrb[22].mxu0 %vm852_vm1, %v848_v54  ;;  %v850_v58 = vmul.f32 0.16666667, %v846_v55 }
 0x22a   :  { %v849_v57 = vmul.f32 0.16666667, %v845_v56 }
 0x22c   :  { %1375 = vmatprep.mubr.msk.f32.mxu0 %vm852_vm1, %v849_v57 }
 0x22d   :  { %1376 = vmatmul.mubr.msk.f32.gmra.mrb[24].mxu0 %vm852_vm1, %v850_v58 }
 0x22e   :  { %1380 = vmatprep.mubr.msk.f32.mxu0 %vm1442_vm2, %v1441_v59 }
 0x2fc   :  { %v1374_v60 = vpop.f32.mrb[22].mxu0 }
 0x2fd   :  { %v951_v61 = vadd.f32 3.0, %v1374_v60  ;;  %v931_v62 = vpop.f32.mrb[23].mxu0 }
 0x2fe   :  { %v950_v63 = vadd.f32 3.0, %v931_v62 }
 0x2ff   :  { %v955_v0 = vmax.f32 %v951_v61, 0.0 }
 0x300   :  { %v954_v1 = vmax.f32 %v950_v63, 0.0  ;;  %v1377_v2 = vpop.f32.mrb[24].mxu0 }
 0x301   :  { %v959_v3 = vmin.f32 %v955_v0, 6.0  ;;  %v953_v4 = vadd.f32 3.0, %v1377_v2  ;;  %v941_v5 = vpop.f32.mrb[25].mxu0 }
 0x302   :  { %v958_v6 = vmin.f32 %v954_v1, 6.0  ;;  %v952_v7 = vadd.f32 3.0, %v941_v5 }
 0x303   :  { %v963_v8 = vmul.f32 %v1374_v60, %v959_v3  ;;  %v957_v9 = vmax.f32 %v953_v4, 0.0 }
 0x304   :  { %v962_v10 = vmul.f32 %v958_v6, %v931_v62  ;;  %v956_v11 = vmax.f32 %v952_v7, 0.0 }
 0x305   :  { %v967_v12 = vmul.f32 0.16666667, %v963_v8  ;;  %v961_v13 = vmin.f32 %v957_v9, 6.0 }
 0x306   :  { %v966_v14 = vmul.f32 0.16666667, %v962_v10  ;;  %v960_v15 = vmin.f32 %v956_v11, 6.0 }
 0x307   :  { %v965_v16 = vmul.f32 %v1377_v2, %v961_v13 }
 0x308   :  { %v970_v17 = vmax.f32 %v966_v14, %v967_v12  ;;  %v964_v18 = vmul.f32 %v960_v15, %v941_v5 }
 0x309   :  { %v969_v19 = vmul.f32 0.16666667, %v965_v16 }
 0x30a   :  { %v968_v20 = vmul.f32 0.16666667, %v964_v18 }
 0x30c   :  { %v971_v22 = vmax.f32 %v968_v20, %v969_v19 }
 0x30e   :  { %v972_v23 = vmax.f32 %v970_v17, %v971_v22 }
 0x310   :  { %1379 = vmatpush3.msra.mxu0 %v972_v23 }
 0x311   :  { %1381 = vmatmul.mubr.msk.f32.vlgmr.msra.gmra.mrb[26].mxu0 %vm852_vm1, %v973_v24  ;;  %1406 = vmatprep.subr.bf16.mxu0 %v1443_v45 }
 0x312   :  { %1408 = vmatpush3.bf16.msra.mxu0 %v1407_v25  ;;  %1387 = vmatprep.mubr.msk.f32.mxu0 %vm1442_vm2, %v1441_v59 }
 0x3e4   :  { %v1043_v26 = vpop.f32.mrb[26].mxu0 }
 0x3e5   :  { %v1382_v27 = vpop.f32.mrb[27].mxu0  ;;  %1388 = vmatmul.mubr.msk.f32.vlgmr.msra.gmra.mrb[28].mxu0 %vm1056_vm3, %v1043_v26 }
 0x4b8   :  { %v1126_v29 = vpop.f32.mrb[28].mxu0 }
 0x4b9   :  { %v1127_v30 = vadd.f32 %v1204_v28, %v1126_v29  ;;  %v1389_v31 = vpop.f32.mrb[29].mxu0 }
 0x4bb   :  { %1131 = vst.msk [vmem:[#allocation2] sm:$0x3] %vm1130_vm4, %v1127_v30 }
 0x4bc   :  { %1428 = shalt.err (!%p1425_p4)
}
 0x4bd   :  { %s1429_s12 = scalar_lea.hbm %s1784_s8, 32 }
 0x4be   :  { %p1430_p5 = scmp.ne.s32.totalorder %s1784_s8, %s1429_s12  ;;  %p1433_p6 = scmp.lt.u32.totalorder %s1429_s12, %s1784_s8 }
 0x4c0   :  { %p1435_p7 = pnand %p1433_p6, %p1430_p5 }
 0x4c2   :  { %1438 = shalt.err (!%p1435_p7)
}
 0x4c3   :  { %1141 = dma.vmem_to_hbm [thread:$0]  %s1139_s9, 32, %s1784_s8, [#allocation3]  }
 0x4c4   :  { %1439 = dma.done.wait [#allocation3], 32  }
 0x4c5   :  { %1440 = vsyncadd [#allocation3], 4294967264 }
 0x4c6   :  { %1145 = vsyncpa [#allocation3], 1 }

</bundles_post_ra>
